<compile_context>
chip_gen: v5e
topology: v5e:2x2
jax: 0.10.0
libtpu: 0.0.40
codegen_flags: <defaults>
</compile_context>

<pallas_src>
import jax
import jax.numpy as jnp
from jax.experimental import pallas as pl
from jax.experimental.pallas import tpu as pltpu


# Packed rows (each row = P pixels) per grid step.  4096 rows = 16K pixels
# ~ 6 MiB of streamed HBM per step (bf16 in / f32 out): per-step pipeline
# overhead is <=15% on v7x and <=8% on v6e/v5e, while keeping the tile small
# enough that occupancy-based tile skipping still has useful granularity.
_ROWS_TARGET = 4096


def _vmem_limit_bytes():
    """Scoped VMEM limit: generous but leaves >=40% headroom on every part."""
    cap = None
    try:
        cap = getattr(pltpu.get_tpu_info(), "vmem_capacity_bytes", None)
    except Exception:
        cap = None
    if not cap:
        cap = 64 * 1024 * 1024          # assume the smallest part (v7x)
    return int(min(32 * 1024 * 1024, (cap * 3) // 5))


def _pick_pack_factor(hw, cin, cout, max_p=8):
    """Smallest pixel-packing factor making both in/out rows 128-lane dense."""
    for p in range(1, max_p + 1):
        if hw % p == 0 and (p * cin) % 128 == 0 and (p * cout) % 128 == 0:
            return p
    return 1                            # fallback: correct, just lane-padded


def _conv_bn_relu_kernel(g_ref, t_ref, x_ref, w_ref, shift_ref, o_ref):
    """out = relu(x0 @ Wb0 + x1 @ Wb1 + shift)   (BN scale folded into Wb*).

    g_ref/t_ref: SMEM work-list refs (used only by the index_maps).
    x_ref:     (1, 2, rows, P*Cin) bf16   the two z-slices of one row tile,
                                          P pixels packed per row.
    w_ref:     (2, P*Cin, P*Cout) bf16    block-diagonal fused conv weights.
    shift_ref: (1, P*Cout) f32            folded BN shift, tiled P times.
    o_ref:     (1, rows, P*Cout) f32
    """
    del g_ref, t_ref
    acc = jnp.dot(x_ref[0, 0], w_ref[0], preferred_element_type=jnp.float32)
    acc = acc + jnp.dot(x_ref[0, 1], w_ref[1],
                        preferred_element_type=jnp.float32)
    o_ref[0] = jnp.maximum(acc + shift_ref[...], 0.0).astype(o_ref.dtype)


def _conv_bn_relu_packed(x, w_block, shift_tiled, g_ids, t_ids, rows):
    """x: [G, 2, HWp, P*Cin] bf16 -> [G, HWp, P*Cout] f32 (only listed tiles)."""
    G, _, HWp, PCin = x.shape
    PCout = w_block.shape[-1]
    n_steps = g_ids.shape[0]

    return pl.pallas_call(
        _conv_bn_relu_kernel,
        out_shape=jax.ShapeDtypeStruct((G, HWp, PCout), jnp.float32),
        grid_spec=pltpu.PrefetchScalarGridSpec(
            num_scalar_prefetch=2,            # g_ids, t_ids -> SMEM
            grid=(n_steps,),                  # only non-empty (g, t) tiles
            in_specs=[
                # row tile of both z-slices of slab g
                pl.BlockSpec((1, 2, rows, PCin),
                             lambda i, g, t: (g[i], 0, t[i], 0)),
                # fused block-diagonal conv weight, resident across the grid
                pl.BlockSpec((2, PCin, PCout), lambda i, g, t: (0, 0, 0)),
                # BN shift, resident
                pl.BlockSpec((1, PCout), lambda i, g, t: (0, 0)),
            ],
            out_specs=pl.BlockSpec((1, rows, PCout),
                                   lambda i, g, t: (g[i], t[i], 0)),
        ),
        compiler_params=pltpu.CompilerParams(
            # data-dependent tile order (work list may contain pad duplicates)
            dimension_semantics=("arbitrary",),
            vmem_limit_bytes=_vmem_limit_bytes()),
    )(g_ids, t_ids, x, w_block, shift_tiled)


def sparse_height_compression_forward(dense_feats, occ_mask, conv_w,
                                      bn_gamma, bn_beta, bn_mean, bn_var,
                                      eps=1e-5):
    """
    Args:
      dense_feats: [B, D, H, W, C_in] zero-filled dense view of the sparse
                   tensor features (channels-last).
      occ_mask:    [B, D, H, W] bool, active input voxels.
      conv_w:      [2, C_in, C_out] SparseConv3d (2,1,1) weights (kz-major).
      bn_*:        [C_out] BatchNorm1d params / running stats (eval mode).
    Returns dict mimicking batch_dict outputs:
      pixel_features [N_out, C_out] f32, pixel_coords [N_out, 3] = (batch,y,x),
      spatial_shape (H, W).
    """
    B, D, H, W, Cin = dense_feats.shape
    assert D % 2 == 0, "height dim must be divisible by the (2,1,1) stride"
    Dout = D // 2
    Cout = conv_w.shape[-1]
    G = B * Dout
    HW = H * W

    # ---- lane-dense packed views (pure metadata reshapes) -------------------
    P = _pick_pack_factor(HW, Cin, Cout)
    HWp = HW // P
    # Pair the two z-slices of each stride-2 kernel application and pack P
    # consecutive pixels per row.  bf16 activations halve streamed input bytes
    # (ideally the upstream backbone emits bf16 so this cast is a no-op).
    x = dense_feats.reshape(G, 2, HWp, P * Cin).astype(jnp.bfloat16)

    # ---- fold eval-mode BN into the conv, expand block-diagonally -----------
    # TODO(synk): eps=1e-5 matches nn.BatchNorm1d defaults; override if the
    # DSVT norm_fn config uses a different eps.
    inv_std = (bn_gamma / jnp.sqrt(bn_var + eps)).astype(jnp.float32)
    w_fused = conv_w.astype(jnp.float32) * inv_std[None, None, :]  # [2,Cin,Cout]
    eye = jnp.eye(P, dtype=jnp.float32)
    w_block = jnp.einsum('kio,pq->kpiqo', w_fused, eye)
    w_block = w_block.reshape(2, P * Cin, P * Cout).astype(jnp.bfloat16)
    shift = (bn_beta - bn_mean * inv_std).astype(jnp.float32)
    shift_tiled = jnp.tile(shift.reshape(1, Cout), (1, P))          # [1,P*Cout]

    # ---- output-site occupancy & sparse tile-skip work list -----------------
    # Regular (non-subM) SparseConv3d: output site active iff any input voxel
    # in its (2,1,1) footprint is active.
    out_mask = occ_mask.reshape(B, Dout, 2, H, W).any(axis=2)       # [B,Dout,H,W]

    rows = HWp if HWp <= _ROWS_TARGET else _ROWS_TARGET
    n_tiles = pl.cdiv(HWp, rows)
    occ_rows = out_mask.reshape(G, HW)
    pad = n_tiles * rows * P - HW
    if pad:
        occ_rows = jnp.pad(occ_rows, ((0, 0), (0, pad)))
    tile_occ = occ_rows.reshape(G, n_tiles, rows * P).any(axis=-1)  # [G,n_tiles]

    # Data-dependent sizes -> eager (this wrapper already syncs for nonzero).
    g_ids, t_ids = jnp.nonzero(tile_occ)
    g_ids = g_ids.astype(jnp.int32)
    t_ids = t_ids.astype(jnp.int32)
    n = int(g_ids.shape[0])
    if n == 0:
        # No active output anywhere: run one dummy tile (never read afterwards).
        g_ids = jnp.zeros((1,), jnp.int32)
        t_ids = jnp.zeros((1,), jnp.int32)
        n = 1
    # Pad the work list to the next power of two (repeat entry 0; rewriting a
    # tile is idempotent) so recompiles are bounded to log2 grid sizes.
    n_pad = 1 << (n - 1).bit_length()
    if n_pad > n:
        g_ids = jnp.concatenate(
            [g_ids, jnp.broadcast_to(g_ids[:1], (n_pad - n,))])
        t_ids = jnp.concatenate(
            [t_ids, jnp.broadcast_to(t_ids[:1], (n_pad - n,))])

    # ---- fused conv + BN + ReLU over non-empty tiles -------------------------
    out_packed = _conv_bn_relu_packed(x, w_block, shift_tiled, g_ids, t_ids,
                                      rows)                 # [G, HWp, P*Cout]
    # Skipped tiles hold uninitialized data and in-tile inactive sites hold
    # relu(shift); both are filtered out by the masked extraction below.
    out_dense = out_packed.reshape(B, Dout, H, W, Cout)     # metadata reshape

    # ---- sparse extraction ----------------------------------------------------
    # TODO(synk): spconv's internal output-index ordering may differ; we use
    # lexicographic (b, z, y, x) order, which is a valid sparse ordering.
    b_idx, z_idx, y_idx, x_idx = jnp.nonzero(out_mask)
    pixel_features = out_dense[b_idx, z_idx, y_idx, x_idx]          # [N, Cout]
    pixel_coords = jnp.stack(
        [b_idx, y_idx, x_idx], axis=-1).astype(jnp.int32)           # [N, 3]
    spatial_shape = (H, W)                                          # shape[1:3]

    return {
        "pixel_features": pixel_features,
        "pixel_coords": pixel_coords,
        "spatial_shape": spatial_shape,
    }


# -----------------------------------------------------------------------------
# Demo / self-check
# -----------------------------------------------------------------------------
if __name__ == "__main__":
    key = jax.random.PRNGKey(0)
    k_feat, k_mask, k_w, k_g, k_b, k_m, k_v = jax.random.split(key, 7)

    # Small shapes consistent with the module: IN_CHANNELS=32,
    # NUM_BEV_FEATURES=64, voxel grid (D=4, H=16, W=16), batch=2.
    B, D, H, W = 2, 4, 16, 16
    C_in, C_out = 32, 64
    eps = 1e-5

    # Sparse tensor as dense + occupancy mask (zero-filled at inactive sites).
    occ_mask = jax.random.uniform(k_mask, (B, D, H, W)) < 0.3
    feats = jax.random.normal(k_feat, (B, D, H, W, C_in), dtype=jnp.float32)
    dense_feats = jnp.where(occ_mask[..., None], feats, 0.0)

    conv_w = 0.1 * jax.random.normal(k_w, (2, C_in, C_out), dtype=jnp.float32)
    bn_gamma = 1.0 + 0.05 * jax.random.normal(k_g, (C_out,), dtype=jnp.float32)
    bn_beta = 0.05 * jax.random.normal(k_b, (C_out,), dtype=jnp.float32)
    bn_mean = 0.05 * jax.random.normal(k_m, (C_out,), dtype=jnp.float32)
    bn_var = jnp.abs(1.0 + 0.05 * jax.random.normal(k_v, (C_out,),
                                                    dtype=jnp.float32))

    out = sparse_height_compression_forward(
        dense_feats, occ_mask, conv_w, bn_gamma, bn_beta, bn_mean, bn_var,
        eps=eps)
    jax.block_until_ready(out["pixel_features"])
    jax.block_until_ready(out["pixel_coords"])

    # Plain-JAX reference matched to the kernel's precision policy
    # (bf16 activations / fused weights, f32 accumulation, f32 output).
    scale = bn_gamma / jnp.sqrt(bn_var + eps)
    shift = bn_beta - bn_mean * scale
    w0 = (conv_w[0] * scale).astype(jnp.bfloat16)
    w1 = (conv_w[1] * scale).astype(jnp.bfloat16)
    x0 = dense_feats[:, 0::2].astype(jnp.bfloat16).reshape(-1, C_in)
    x1 = dense_feats[:, 1::2].astype(jnp.bfloat16).reshape(-1, C_in)
    ref = jnp.maximum(
        jnp.dot(x0, w0, preferred_element_type=jnp.float32)
        + jnp.dot(x1, w1, preferred_element_type=jnp.float32) + shift, 0.0)
    ref_dense = ref.reshape(B, D // 2, H, W, C_out)
    ref_mask = jnp.logical_or(occ_mask[:, 0::2], occ_mask[:, 1::2])
    bi, zi, yi, xi = jnp.nonzero(ref_mask)
    ref_pix = ref_dense[bi, zi, yi, xi]
    ref_coords = jnp.stack([bi, yi, xi], axis=-1).astype(jnp.int32)

    assert out["pixel_features"].shape == ref_pix.shape
    assert out["pixel_coords"].shape == (ref_pix.shape[0], 3)
    assert out["spatial_shape"] == (H, W)
    err = float(jnp.max(jnp.abs(out["pixel_features"] - ref_pix))) \
        if ref_pix.size else 0.0
    assert jnp.allclose(out["pixel_features"], ref_pix,
                        atol=2e-3, rtol=2e-3), err
    assert jnp.array_equal(out["pixel_coords"], ref_coords)

    print("KERNEL_OK")
</pallas_src>

<mosaic_0001>
module attributes {stable_mosaic.version = 11 : i64} {
  func.func @_conv_bn_relu_kernel(%arg0: i32, %arg1: memref<4xi32, #tpu.memory_space<smem>>, %arg2: memref<4xi32, #tpu.memory_space<smem>>, %arg3: memref<1x2x64x128xbf16, #tpu.memory_space<vmem>>, %arg4: memref<2x128x256xbf16, #tpu.memory_space<vmem>>, %arg5: memref<1x256xf32, #tpu.memory_space<vmem>>, %arg6: memref<1x64x256xf32, #tpu.memory_space<vmem>>) attributes {dimension_semantics = [#tpu.dimension_semantics<arbitrary>], iteration_bounds = array<i64: 4>, scalar_prefetch = 2 : i64, scratch_operands = 0 : i64, tpu.core_type = #tpu.core_type<tc>, window_params = [{transform_indices = @transform_0, window_bounds = array<i64: 1, 2, 64, 128>}, {pipeline_mode = #tpu.pipeline_mode<synchronous>, transform_indices = @transform_1, window_bounds = array<i64: 2, 128, 256>}, {pipeline_mode = #tpu.pipeline_mode<synchronous>, transform_indices = @transform_2, window_bounds = array<i64: 1, 256>}, {transform_indices = @transform_3, window_bounds = array<i64: 1, 64, 256>}]} {
    %c0 = arith.constant 0 : index
    %c0_0 = arith.constant 0 : index
    %c0_1 = arith.constant 0 : index
    %c0_2 = arith.constant 0 : index
    %0 = vector.load %arg3[%c0, %c0_0, %c0_1, %c0_2] : memref<1x2x64x128xbf16, #tpu.memory_space<vmem>>, vector<1x1x64x128xbf16>
    %1 = vector.shape_cast %0 : vector<1x1x64x128xbf16> to vector<64x128xbf16>
    %c0_3 = arith.constant 0 : index
    %c0_4 = arith.constant 0 : index
    %c0_5 = arith.constant 0 : index
    %2 = vector.load %arg4[%c0_3, %c0_4, %c0_5] : memref<2x128x256xbf16, #tpu.memory_space<vmem>>, vector<1x128x256xbf16>
    %3 = vector.shape_cast %2 : vector<1x128x256xbf16> to vector<128x256xbf16>
    %cst = arith.constant dense<0.000000e+00> : vector<64x256xf32>
    %4 = tpu.matmul %1, %3, %cst {dimension_numbers = #tpu.dot_dimension_numbers<[1], [0], [0], [1], [0, 0, 1, 1], [], []>} : vector<64x128xbf16>, vector<128x256xbf16>, vector<64x256xf32> -> vector<64x256xf32>
    %c0_6 = arith.constant 0 : index
    %c1 = arith.constant 1 : index
    %c0_7 = arith.constant 0 : index
    %c0_8 = arith.constant 0 : index
    %5 = vector.load %arg3[%c0_6, %c1, %c0_7, %c0_8] : memref<1x2x64x128xbf16, #tpu.memory_space<vmem>>, vector<1x1x64x128xbf16>
    %6 = vector.shape_cast %5 : vector<1x1x64x128xbf16> to vector<64x128xbf16>
    %c1_9 = arith.constant 1 : index
    %c0_10 = arith.constant 0 : index
    %c0_11 = arith.constant 0 : index
    %7 = vector.load %arg4[%c1_9, %c0_10, %c0_11] : memref<2x128x256xbf16, #tpu.memory_space<vmem>>, vector<1x128x256xbf16>
    %8 = vector.shape_cast %7 : vector<1x128x256xbf16> to vector<128x256xbf16>
    %cst_12 = arith.constant dense<0.000000e+00> : vector<64x256xf32>
    %9 = tpu.matmul %6, %8, %cst_12 {dimension_numbers = #tpu.dot_dimension_numbers<[1], [0], [0], [1], [0, 0, 1, 1], [], []>} : vector<64x128xbf16>, vector<128x256xbf16>, vector<64x256xf32> -> vector<64x256xf32>
    %10 = arith.addf %4, %9 : vector<64x256xf32>
    %c0_13 = arith.constant 0 : index
    %c0_14 = arith.constant 0 : index
    %11 = vector.load %arg5[%c0_13, %c0_14] : memref<1x256xf32, #tpu.memory_space<vmem>>, vector<1x256xf32>
    %12 = vector.broadcast %11 : vector<1x256xf32> to vector<64x256xf32>
    %13 = arith.addf %10, %12 : vector<64x256xf32>
    %cst_15 = arith.constant 0.000000e+00 : f32
    %14 = vector.broadcast %cst_15 : f32 to vector<64x256xf32>
    %15 = arith.maximumf %13, %14 : vector<64x256xf32>
    %c0_16 = arith.constant 0 : index
    %c0_17 = arith.constant 0 : index
    %c0_18 = arith.constant 0 : index
    %16 = vector.load %arg6[%c0_16, %c0_17, %c0_18] : memref<1x64x256xf32, #tpu.memory_space<vmem>>, vector<1x64x256xf32>
    %17 = vector.shape_cast %16 : vector<1x64x256xf32> to vector<64x256xf32>
    %18 = vector.shape_cast %15 : vector<64x256xf32> to vector<1x64x256xf32>
    tpu.vector_store %arg6[%c0_16, %c0_17, %c0_18], %18 {strides = array<i32>} : memref<1x64x256xf32, #tpu.memory_space<vmem>>, vector<1x64x256xf32>,
    return
  }
  func.func @transform_0(%arg0: i32, %arg1: memref<4xi32, #tpu.memory_space<smem>>, %arg2: memref<4xi32, #tpu.memory_space<smem>>) -> (i32, i32, i32, i32) {
    %0 = arith.index_cast %arg0 : i32 to index
    %1 = memref.load %arg1[%0] : memref<4xi32, #tpu.memory_space<smem>>
    %2 = arith.index_cast %arg0 : i32 to index
    %3 = memref.load %arg2[%2] : memref<4xi32, #tpu.memory_space<smem>>
    %c0_i32 = arith.constant 0 : i32
    %c0_i32_0 = arith.constant 0 : i32
    %c0_i32_1 = arith.constant 0 : i32
    return %1, %c0_i32, %3, %c0_i32_0 : i32, i32, i32, i32
  }
  func.func @transform_1(%arg0: i32, %arg1: memref<4xi32, #tpu.memory_space<smem>>, %arg2: memref<4xi32, #tpu.memory_space<smem>>) -> (i32, i32, i32) {
    %c0_i32 = arith.constant 0 : i32
    %c0_i32_0 = arith.constant 0 : i32
    %c0_i32_1 = arith.constant 0 : i32
    %c0_i32_2 = arith.constant 0 : i32
    return %c0_i32, %c0_i32_0, %c0_i32_1 : i32, i32, i32
  }
  func.func @transform_2(%arg0: i32, %arg1: memref<4xi32, #tpu.memory_space<smem>>, %arg2: memref<4xi32, #tpu.memory_space<smem>>) -> (i32, i32) {
    %c0_i32 = arith.constant 0 : i32
    %c0_i32_0 = arith.constant 0 : i32
    %c0_i32_1 = arith.constant 0 : i32
    return %c0_i32, %c0_i32_0 : i32, i32
  }
  func.func @transform_3(%arg0: i32, %arg1: memref<4xi32, #tpu.memory_space<smem>>, %arg2: memref<4xi32, #tpu.memory_space<smem>>) -> (i32, i32, i32) {
    %0 = arith.index_cast %arg0 : i32 to index
    %1 = memref.load %arg1[%0] : memref<4xi32, #tpu.memory_space<smem>>
    %2 = arith.index_cast %arg0 : i32 to index
    %3 = memref.load %arg2[%2] : memref<4xi32, #tpu.memory_space<smem>>
    %c0_i32 = arith.constant 0 : i32
    %c0_i32_0 = arith.constant 0 : i32
    return %1, %3, %c0_i32 : i32, i32, i32
  }
}

</mosaic_0001>

<bundles_post_ra>
// kernel: tpu_custom_call.1
= control target key start
LH: loop header
LB: loop body
LE: loop exit
PB: predicated region body
PF: predicated region fallthrough
CT: control target
= control target key end

     0   :  { %s1294_s24 = smov [#allocation3]   ;;  %s1295_s25 = smov [#allocation4]   ;;  %s1578_s0 = inlined_call_operand.hbm [shape: s32[4], index: 0, kind: input, shape index: {}]   ;;  %s1579_s2 = inlined_call_operand.hbm [shape: bf16[4,2,64,128], index: 2, kind: input, shape index: {}]   ;;  %s1580_s3 = inlined_call_operand.hbm [shape: bf16[2,128,256], index: 3, kind: input, shape index: {}]   ;;  %s1581_s4 = inlined_call_operand.vmem [shape: f32[1,256], index: 4, kind: input, shape index: {}]   ;;  %s1582_s5 = inlined_call_operand.hbm [shape: f32[4,64,256], index: 5, kind: output, shape index: {}]   ;;  %s1583_s1 = inlined_call_operand.hbm [shape: s32[4], index: 1, kind: input, shape index: {}]  }
   0x1   :  { %1589 = sst [smem:[#allocation27_spill]] %s1580_s3  ;;  %s11_s20 = sshll.u32 %s1578_s0, 4  ;;  %s12_s20 = int_to_ptr.hbm [resolvable:$true] %s11_s20 }
   0x2   :  { %s16_s23 = sshll.u32 %s1583_s1, 4  ;;  %s17_s23 = int_to_ptr.hbm [resolvable:$true] %s16_s23 }
   0x3   :  { %14 = dma.hbm_to_smem %s12_s20, 16, %s1294_s24, [#allocation2] }
   0x4   :  { %19 = dma.hbm_to_smem %s17_s23, 16, %s1295_s25, [#allocation2] }
   0x5   :  { %1252 = dma.done.wait [#allocation2], 32 }
   0x6   :  { %1253 = vsyncadd [#allocation2], 4294967264 }
   0x7   :  { %22 = sfence }
   0x8   :  { %23 = vsyncpa [#allocation6], 0 }
   0x9   :  { %25 = vsyncpa [#allocation6 + $0x1], 0 }
   0xa   :  { %26 = vsyncpa [#allocation9], 0 }
   0xb   :  { %27 = vsyncpa [#allocation7], 0 }
   0xc   :  { %29 = vsyncpa [#allocation7 + $0x1], 0  ;;  %s1339_s26 = smov 0   ;;  %s1341_s0 = smov 0  }
   0xd   :  { %s1343_s27 = smov 0   ;;  %s1345_s1 = smov 0  }
   0xe   :  { %s1347_s28 = smov 0   ;;  %s1349_s29 = smov 0  }
   0xf   :  { %s1351_s30 = smov 0  }
  0x10 LB: > { %1590 = sst [smem:[#allocation21_spill]] %s1276_s27  ;;  %s1373_s6 = sadd.s32 4294967295, %s1292_s30   ;;  %s1292_s30 = sphi %s1351_s30, %s1604_s30   ;;  %s1288_s29 = sphi %s1349_s29, %s1608_s29   ;;  %s1284_s28 = sphi %s1347_s28, %s1612_s28   ;;  %s1280_s1 = sphi %s1345_s1, %s1611_s1   ;;  %s1276_s27 = sphi %s1343_s27, %s1606_s27   ;;  %s1272_s0 = sphi %s1341_s0, %s1610_s0   ;;  %s1268_s26 = sphi %s1339_s26, %s1609_s26  }
  0x11   : > { %1591 = sst [smem:[#allocation22_spill]] %s1288_s29  ;;  %s783_s7 = sadd.s32 4294967294, %s1292_s30  }
  0x12   : > { %s1377_s8 = sadd.s32 1, %s1292_s30   ;;  %p61_p0 = scmp.ne.s32.totalorder %s1284_s28, %s1280_s1 }
  0x13   : > { %1592 = sst [smem:[#allocation23_spill]] %s1377_s8  ;;  %p62_p1 = scmp.eq.s32.totalorder %s1373_s6, 0 }
  0x14   : > { %s113_s9 = sld [smem:[#allocation3 + %s1292_s30]]  ;;  %s122_s11 = sadd.s32 1, %s1276_s27 }
  0x15   : > { %s114_s10 = sld [smem:[#allocation4 + %s1292_s30]]  ;;  %p1386_p2 = por %p62_p1, %p61_p0 }
  0x16   : > { %s115_s13 = sld [smem:[#allocation3 + %s1377_s8]]  ;;  %p132_p3 = scmp.ne.s32.totalorder %s1276_s27, %s1272_s0 }
  0x17   : > { %s116_s14 = sld [smem:[#allocation4 + %s1377_s8]]  ;;  %p133_p4 = scmp.eq.s32.totalorder %s1373_s6, 3 }
  0x18   : > { %p138_p5 = scmp.ne.s32.totalorder %s1272_s0, %s1268_s26  ;;  %p139_p6 = scmp.eq.s32.totalorder %s783_s7, 3 }
  0x19   : > { %p784_p7 = scmp.ge.s32.totalorder %s1292_s30, 1  ;;  %p1398_p8 = por %p133_p4, %p132_p3 }
  0x1a   : > { %p146_p9 = scmp.lt.s32.totalorder %s1292_s30, 5  ;;  %p1403_p10 = por %p139_p6, %p138_p5 }
  0x1b   : > { %s1598_s3 = sld [smem:[#allocation27_spill]]  ;;  %s1296_s25 = smov [#allocation8]  }
  0x1c   : > { %s1595_s16 = scalar_select %p1403_p10, 1, 0 }
  0x1d   : > { %s117_s17 = ssub.s32 %s113_s9, %s115_s13  ;;  %p1407_p11 = pnand %p784_p7, %p146_p9 }
  0x1e   : > { %1596 = sst [smem:[#allocation24_spill]] %s1595_s16  ;;  %s118_s19 = ssub.s32 %s114_s10, %s116_s14 }
  0x1f   : > { %s119_s23 = sor.u32 %s118_s19, %s117_s17  ;;  %p1027_p12 = pneg %p1407_p11 }
  0x20   : > { %p120_p13 = scmp.eq.s32.totalorder %s119_s23, 0  ;;  %s159_s1 = sshll.u32 %s1296_s25, 4  ;;  %s160_s1 = int_to_ptr.vmem [resolvable:$true] %s159_s1 }
  0x21   : > { %s157_s22 = sshll.u32 %s1598_s3, 4  ;;  %p1028_p0 = pnand %p1027_p12, %p62_p1  ;;  %s158_s22 = int_to_ptr.hbm [resolvable:$true] %s157_s22 }
  0x22   : > { %s1419_s24 = scalar_select %p120_p13, %s1276_s27, %s122_s11  }
  0x23   : > { %s1297_s7 = smov 128   ;;  %s1298_s9 = smov 8  }
  0x24   : > { %1599 = sst [smem:[#allocation25_spill]] %s1419_s24  ;;  %p55_p3 = scmp.ne.s32.totalorder %s1288_s29, %s1284_s28 }
  0x25   : > { %1030 = dma.hbm_to_vmem [thread:$0]  (!%p1028_p0), %s158_s22, 4096, %s160_s1, [#allocation9], %s1297_s7, %s1297_s7, %s1298_s9  }
  0x26   : > { %s39_s10 = sld [smem:[#allocation3 + %s1292_s30]]  ;;  %p56_p4 = scmp.eq.s32.totalorder %s1292_s30, 0 }
  0x27   : > { %s40_s13 = sld [smem:[#allocation4 + %s1292_s30]]  ;;  %s48_s19 = sadd.s32 1, %s1288_s29 }
  0x28   : > { %s41_s14 = sld [smem:[#allocation3 + %s1377_s8]]  ;;  %p1429_p5 = por %p56_p4, %p55_p3 }
  0x29   : > { %s42_s17 = sld [smem:[#allocation4 + %s1377_s8]]  ;;  %p1044_p6 = scmp.lt.s32.totalorder %s1292_s30, 4 }
  0x2a   : > { %s176_s23 = sand.u32 1, %s1288_s29  }
  0x2b   : > { %p1437_p9 = pnand %p1044_p6, %p1429_p5  ;;  %s177_s11 = scalar_lea.sflag [#allocation6], %s176_s23 }
  0x2c   : > { %s1013_s1 = scalar_select %p1429_p5, [#allocation3], [#allocation11] }
  0x2d   : > { %s1014_s9 = scalar_select %p1429_p5, %s1292_s30, 0 }
  0x2e   : > { %s43_s20 = ssub.s32 %s39_s10, %s41_s14  ;;  %s1614_s1 = smov (!%p1044_p6, %s1013_s1), [#allocation15] }
  0x2f   : > { %s44_s21 = ssub.s32 %s40_s13, %s42_s17  ;;  %s1616_s9 = smov (!%p1044_p6, %s1014_s9), 0 }
  0x30   : > { %s45_s22 = sor.u32 %s44_s21, %s43_s20  ;;  %s181_s13 = sld [smem:[%s1614_s1 + %s1616_s9]] }
  0x31   : > { %p46_p7 = scmp.eq.s32.totalorder %s45_s22, 0  ;;  %s787_s14 = sshll.u32 %s176_s23, 6 }
  0x32   : > { %s1015_s10 = scalar_select %p1429_p5, [#allocation4], [#allocation12] }
  0x33   : > { %s1444_s7 = scalar_select %p46_p7, %s1288_s29, %s48_s19  }
  0x34   : > { %s1618_s10 = smov (!%p1044_p6, %s1015_s10), [#allocation16]  ;;  %s180_s22 = scalar_lea.vmem [#allocation5], %s787_s14 }
  0x35   : > { %1602 = sst [smem:[#allocation26_spill]] %s1444_s7  ;;  %s192_s3 = sshll.u32 %s180_s22, 4  ;;  %s193_s3 = int_to_ptr.vmem [resolvable:$true] %s192_s3 }
  0x36   : > { %s182_s17 = sld [smem:[%s1618_s10 + %s1616_s9]]  ;;  %s789_s20 = sshll.u32 %s181_s13, 4 }
  0x37   : > { %p1170_p13 = pneg %p1437_p9 }
  0x3c   : > { %s788_s21 = sshll.u32 %s182_s17, 3 }
  0x3d   : > { %s187_s24 = sadd.s32 %s789_s20, %s788_s21 }
  0x3e   : > { %s790_s27 = sshll.u32 %s187_s24, 2  ;;  %s1173_s24 = scalar_lea.hbm %s1579_s2, 256 }
  0x3f   : > { %s189_s7 = scalar_lea.hbm %s1579_s2, %s790_s27 }
  0x40   : > { %s190_s29 = sshll.u32 %s189_s7, 4  ;;  %s191_s29 = int_to_ptr.hbm [resolvable:$true] %s190_s29 }
  0x41   : > { %s1166_s16 = sshra.s32 %s191_s29, 4  ;;  %s1167_s16 = int_to_ptr.hbm [resolvable:$true] %s1166_s16 }
  0x42   : > { %s1168_s1 = scalar_lea.hbm %s1167_s16, 64  ;;  %p1174_p4 = scmp.lt.s32.totalorder %s1167_s16, %s1579_s2 }
  0x43   : > { %p1169_p12 = scmp.ne.s32.totalorder %s1167_s16, %s1168_s1  ;;  %p1175_p5 = scmp.lt.s32.totalorder %s1173_s24, %s1168_s1 }
  0x45   : > { %p1171_p0 = pnand %p1170_p13, %p1169_p12  ;;  %p1176_p6 = por %p1175_p5, %p1174_p4 }
  0x47   : > { %p1172_p3 = pneg %p1171_p0 }
  0x49   : > { %p1177_p7 = pnand %p1176_p6, %p1172_p3 }
  0x4b   : > { %1180 = shalt.err (!%p1177_p7)
}
  0x4c   : > { %s1299_s27 = smov 64   ;;  %s1300_s8 = smov 4  }
  0x4d   : > { %1038 = dma.hbm_to_vmem [thread:$0]  (!%p1437_p9), %s191_s29, 1024, %s193_s3, %s177_s11, %s1299_s27, %s1299_s27, %s1300_s8  }
  0x4e   : > { %204 = sbr.rel (%p1407_p11) target bundleno = 321 (0x141), region = 32  ;;  %s206_s23 = sand.u32 (!%p1407_p11), 1, %s1284_s28  }
  0x4f   : > { %s792_s7 = sshll.u32 (!%p1407_p11), %s206_s23, 6  ;;  %s207_s17 = scalar_lea.sflag (!%p1407_p11), [#allocation6], %s206_s23 }
  0x50   : > { %s1467_s20 = scalar_lea.vmem (!%p1407_p11), [#allocation5], %s792_s7 }
  0x53   : > { %1255 = dma.done.wait (%p1386_p2), %s207_s17, 1024  }
  0x54   : > { %1257 = vsyncadd (%p1386_p2), %s207_s17, 4294966272 }
  0x55   : > { %1259 = dma.done.wait (%p62_p1), [#allocation9], 4096  }
  0x56   : > { %1261 = vsyncadd (%p62_p1), [#allocation9], 4294963200  ;;  %v877_v0 = vld [vmem:[#allocation8 + $0xf0] sm:$0xf]  ;;  %v1009_v1 = vld [vmem:[#allocation8 + $0xf4] sm:$0xf0] }
  0x57   : > { %v1008_v2 = vld [vmem:[#allocation8 + $0xf4] sm:$0xf]  ;;  %v878_v3 = vor.u32 %v1009_v1, %v877_v0  ;;  %v879_v4 = vld [vmem:[#allocation8 + $0xf8] sm:$0xf0]  ;;  %v957_v5 = vld [vmem:[#allocation8 + $0x70] sm:$0xf] }
  0x58   : > { %v989_v6 = vld [vmem:[#allocation8 + $0x74] sm:$0xf0]  ;;  %v882_v7 = vor.u32 %v1008_v2, %v879_v4  ;;  %v988_v9 = vld [vmem:[#allocation8 + $0x74] sm:$0xf]  ;;  %v959_v10 = vld [vmem:[#allocation8 + $0x78] sm:$0xf0] }
  0x59   : > { %v958_v8 = vor.u32 %v989_v6, %v957_v5  ;;  %v869_v11 = vld [vmem:[#allocation8 + $0xe0] sm:$0xf]  ;;  %399 = vmatpush.bf16.msra.mxu0 %v878_v3  ;;  %v962_v12 = vor.u32 %v988_v9, %v959_v10  ;;  %v1007_v13 = vld [vmem:[#allocation8 + $0xe4] sm:$0xf0]  ;;  %v1006_v14 = vld [vmem:[#allocation8 + $0xe4] sm:$0xf] }
  0x5a   : > { %v871_v15 = vld [vmem:[#allocation8 + $0xe8] sm:$0xf0]  ;;  %428 = vmatpush.bf16.msra.mxu1 %v882_v7  ;;  %v870_v16 = vor.u32 %v1007_v13, %v869_v11  ;;  %v949_v18 = vld [vmem:[#allocation8 + $0x60] sm:$0xf]  ;;  %v987_v19 = vld [vmem:[#allocation8 + $0x64] sm:$0xf0] }
  0x5b   : > { %561 = vmatpush.bf16.msra.mxu2 %v958_v8  ;;  %v874_v17 = vor.u32 %v1006_v14, %v871_v15  ;;  %v986_v20 = vld [vmem:[#allocation8 + $0x64] sm:$0xf]  ;;  %590 = vmatpush.bf16.msra.mxu3 %v962_v12  ;;  %v950_v21 = vor.u32 %v987_v19, %v949_v18  ;;  %v951_v22 = vld [vmem:[#allocation8 + $0x68] sm:$0xf0]  ;;  %v861_v23 = vld [vmem:[#allocation8 + $0xd0] sm:$0xf] }
  0x5c   : > { %v1005_v24 = vld [vmem:[#allocation8 + $0xd4] sm:$0xf0]  ;;  %v954_v25 = vor.u32 %v986_v20, %v951_v22  ;;  %v1004_v26 = vld [vmem:[#allocation8 + $0xd4] sm:$0xf]  ;;  %v863_v27 = vld [vmem:[#allocation8 + $0xd8] sm:$0xf0] }
  0x5d   : > { %v941_v28 = vld [vmem:[#allocation8 + $0x50] sm:$0xf]  ;;  %400 = vmatpush.bf16.msra.mxu0 %v870_v16  ;;  %v862_v29 = vor.u32 %v1005_v24, %v861_v23  ;;  %v985_v30 = vld [vmem:[#allocation8 + $0x54] sm:$0xf0]  ;;  %v984_v31 = vld [vmem:[#allocation8 + $0x54] sm:$0xf]  ;;  %v866_v33 = vor.u32 %v1004_v26, %v863_v27 }
  0x5e   : > { %v943_v32 = vld [vmem:[#allocation8 + $0x58] sm:$0xf0]  ;;  %429 = vmatpush.bf16.msra.mxu1 %v874_v17  ;;  %v942_v34 = vor.u32 %v985_v30, %v941_v28  ;;  %v853_v35 = vld [vmem:[#allocation8 + $0xc0] sm:$0xf]  ;;  %v1003_v36 = vld [vmem:[#allocation8 + $0xc4] sm:$0xf0] }
  0x5f   : > { %562 = vmatpush.bf16.msra.mxu2 %v950_v21  ;;  %v1002_v37 = vld [vmem:[#allocation8 + $0xc4] sm:$0xf]  ;;  %591 = vmatpush.bf16.msra.mxu3 %v954_v25  ;;  %v946_v38 = vor.u32 %v984_v31, %v943_v32  ;;  %v855_v39 = vld [vmem:[#allocation8 + $0xc8] sm:$0xf0]  ;;  %v933_v40 = vld [vmem:[#allocation8 + $0x40] sm:$0xf]  ;;  %v854_v44 = vor.u32 %v1003_v36, %v853_v35 }
  0x60   : > { %v983_v41 = vld [vmem:[#allocation8 + $0x44] sm:$0xf0]  ;;  %v982_v42 = vld [vmem:[#allocation8 + $0x44] sm:$0xf]  ;;  %v935_v43 = vld [vmem:[#allocation8 + $0x48] sm:$0xf0]  ;;  %v858_v45 = vor.u32 %v1002_v37, %v855_v39 }
  0x61   : > { %401 = vmatpush.bf16.msra.mxu0 %v862_v29  ;;  %v934_v46 = vor.u32 %v983_v41, %v933_v40  ;;  %v845_v47 = vld [vmem:[#allocation8 + $0xb0] sm:$0xf]  ;;  %v1001_v48 = vld [vmem:[#allocation8 + $0xb4] sm:$0xf0]  ;;  %v1000_v49 = vld [vmem:[#allocation8 + $0xb4] sm:$0xf]  ;;  %v938_v50 = vor.u32 %v982_v42, %v935_v43 }
  0x62   : > { %430 = vmatpush.bf16.msra.mxu1 %v866_v33  ;;  %v847_v51 = vld [vmem:[#allocation8 + $0xb8] sm:$0xf0]  ;;  %v925_v52 = vld [vmem:[#allocation8 + $0x30] sm:$0xf]  ;;  %v981_v53 = vld [vmem:[#allocation8 + $0x34] sm:$0xf0]  ;;  %v846_v56 = vor.u32 %v1001_v48, %v845_v47 }
  0x63   : > { %563 = vmatpush.bf16.msra.mxu2 %v942_v34  ;;  %592 = vmatpush.bf16.msra.mxu3 %v946_v38  ;;  %v980_v54 = vld [vmem:[#allocation8 + $0x34] sm:$0xf]  ;;  %v927_v55 = vld [vmem:[#allocation8 + $0x38] sm:$0xf0]  ;;  %v850_v57 = vor.u32 %v1000_v49, %v847_v51  ;;  %v926_v58 = vor.u32 %v981_v53, %v925_v52  ;;  %v837_v59 = vld [vmem:[#allocation8 + $0xa0] sm:$0xf] }
  0x64   : > { %v999_v60 = vld [vmem:[#allocation8 + $0xa4] sm:$0xf0]  ;;  %v998_v61 = vld [vmem:[#allocation8 + $0xa4] sm:$0xf]  ;;  %v930_v62 = vor.u32 %v980_v54, %v927_v55  ;;  %v839_v63 = vld [vmem:[#allocation8 + $0xa8] sm:$0xf0] }
  0x65   : > { %402 = vmatpush.bf16.msra.mxu0 %v854_v44  ;;  %v917_v0 = vld [vmem:[#allocation8 + $0x20] sm:$0xf]  ;;  %v979_v1 = vld [vmem:[#allocation8 + $0x24] sm:$0xf0]  ;;  %v978_v2 = vld [vmem:[#allocation8 + $0x24] sm:$0xf]  ;;  %v838_v4 = vor.u32 %v999_v60, %v837_v59  ;;  %v842_v5 = vor.u32 %v998_v61, %v839_v63 }
  0x66   : > { %431 = vmatpush.bf16.msra.mxu1 %v858_v45  ;;  %v919_v3 = vld [vmem:[#allocation8 + $0x28] sm:$0xf0]  ;;  %v918_v6 = vor.u32 %v979_v1, %v917_v0  ;;  %v829_v7 = vld [vmem:[#allocation8 + $0x90] sm:$0xf]  ;;  %v997_v8 = vld [vmem:[#allocation8 + $0x94] sm:$0xf0] }
  0x67   : > { %564 = vmatpush.bf16.msra.mxu2 %v934_v46  ;;  %593 = vmatpush.bf16.msra.mxu3 %v938_v50  ;;  %v996_v9 = vld [vmem:[#allocation8 + $0x94] sm:$0xf]  ;;  %v922_v10 = vor.u32 %v978_v2, %v919_v3  ;;  %v831_v11 = vld [vmem:[#allocation8 + $0x98] sm:$0xf0]  ;;  %v909_v12 = vld [vmem:[#allocation8 + $0x10] sm:$0xf]  ;;  %v830_v16 = vor.u32 %v997_v8, %v829_v7 }
  0x68   : > { %v977_v13 = vld [vmem:[#allocation8 + $0x14] sm:$0xf0]  ;;  %v976_v14 = vld [vmem:[#allocation8 + $0x14] sm:$0xf]  ;;  %v911_v15 = vld [vmem:[#allocation8 + $0x18] sm:$0xf0]  ;;  %v834_v17 = vor.u32 %v996_v9, %v831_v11 }
  0x69   : > { %403 = vmatpush.bf16.msra.mxu0 %v846_v56  ;;  %v910_v18 = vor.u32 %v977_v13, %v909_v12  ;;  %v821_v19 = vld [vmem:[#allocation8 + $0x80] sm:$0xf]  ;;  %v995_v20 = vld [vmem:[#allocation8 + $0x84] sm:$0xf0]  ;;  %v994_v21 = vld [vmem:[#allocation8 + $0x84] sm:$0xf]  ;;  %v914_v22 = vor.u32 %v976_v14, %v911_v15 }
  0x6a   : > { %432 = vmatpush.bf16.msra.mxu1 %v850_v57  ;;  %v823_v23 = vld [vmem:[#allocation8 + $0x88] sm:$0xf0]  ;;  %v901_v24 = vld [vmem:[#allocation8] sm:$0xf]  ;;  %v975_v25 = vld [vmem:[#allocation8 + $0x4] sm:$0xf0]  ;;  %v822_v28 = vor.u32 %v995_v20, %v821_v19 }
  0x6b   : > { %565 = vmatpush.bf16.msra.mxu2 %v926_v58  ;;  %594 = vmatpush.bf16.msra.mxu3 %v930_v62  ;;  %v974_v26 = vld [vmem:[#allocation8 + $0x4] sm:$0xf]  ;;  %v903_v27 = vld [vmem:[#allocation8 + $0x8] sm:$0xf0]  ;;  %v826_v29 = vor.u32 %v994_v21, %v823_v23  ;;  %v902_v30 = vor.u32 %v975_v25, %v901_v24  ;;  %v992_v36 = vld [vmem:[%s1467_s20 + $0x30] sm:$0xff]  ;;  %s236_s12 = sand.u32 1, %s1272_s0  }
  0x6c   : > { %v906_v31 = vor.u32 %v974_v26, %v903_v27  ;;  %v990_v32 = vld [vmem:[%s1467_s20 + $0x20] sm:$0xff]  ;;  %v991_v34 = vld [vmem:[%s1467_s20 + $0x28] sm:$0xff]  ;;  %v972_v37 = vld [vmem:[%s1467_s20 + $0x10] sm:$0xff]  ;;  %s794_s16 = sshll.u32 %s236_s12, 7  ;;  %s1620_s6 = smov (!%p1398_p8, %s1373_s6), 0 }
  0x6d   : > { %404 = vmatpush.bf16.msra.mxu0 %v838_v4  ;;  %v970_v33 = vld [vmem:[%s1467_s20] sm:$0xff]  ;;  %v971_v35 = vld [vmem:[%s1467_s20 + $0x8] sm:$0xff]  ;;  %v993_v38 = vld [vmem:[%s1467_s20 + $0x38] sm:$0xff]  ;;  %s1497_s18 = scalar_lea.vmem [#allocation10], %s794_s16  ;;  %s674_s8 = scalar_lea.sflag [#allocation7], %s236_s12 }
  0x6e   : > { %433 = vmatpush.bf16.msra.mxu1 %v842_v5  ;;  %v973_v39 = vld [vmem:[%s1467_s20 + $0x18] sm:$0xff]  ;;  %s1021_s25 = scalar_select %p1398_p8, [#allocation3], [#allocation13] }
  0x6f   : > { %566 = vmatpush.bf16.msra.mxu2 %v918_v6  ;;  %595 = vmatpush.bf16.msra.mxu3 %v922_v10  ;;  %v619_v42 = vld [vmem:[%s1581_s4] sm:$0x3]  ;;  %s1023_s21 = scalar_select %p1398_p8, [#allocation4], [#allocation14] }
  0x70   : > { %v1489_v43 = vperm.slane %v619_v42, 0  ;;  %v1491_v45 = vperm.slane %v619_v42, 1  ;;  %s681_s22 = sld [smem:[%s1021_s25 + %s1620_s6]]  ;;  %s691_s14 = sshll.u32 %s1497_s18, 4  ;;  %s692_s14 = int_to_ptr.vmem [resolvable:$true] %s691_s14 }
  0x71   : > { %405 = vmatpush.bf16.msra.mxu0 %v830_v16  ;;  %s682_s19 = sld [smem:[%s1023_s21 + %s1620_s6]]  ;;  %s1216_s3 = scalar_lea.hbm %s1582_s5, 512 }
  0x72   : > { %434 = vmatpush.bf16.msra.mxu1 %v834_v17 }
  0x73   : > { %567 = vmatpush.bf16.msra.mxu2 %v910_v18  ;;  %596 = vmatpush.bf16.msra.mxu3 %v914_v22 }
  0x75   : > { %406 = vmatpush.bf16.msra.mxu0 %v822_v28 }
  0x76   : > { %435 = vmatpush.bf16.msra.mxu1 %v826_v29  ;;  %s966_s1 = sshll.u32 %s681_s22, 4 }
  0x77   : > { %568 = vmatpush.bf16.msra.mxu2 %v902_v30  ;;  %597 = vmatpush.bf16.msra.mxu3 %v906_v31  ;;  %s1010_s11 = sshll.u32 %s682_s19, 4 }
  0x78   : > { %407 = vmatmul.bf16.vlgmr.msra.gmra.mxu0 %v990_v32  ;;  %s688_s6 = sadd.s32 %s1010_s11, %s966_s1 }
  0x79   : > { %436 = vmatmul.bf16.vlgmr.msra.gmra.mxu1 %v990_v32  ;;  %s967_s9 = sshll.u32 %s688_s6, 3 }
  0x7a   : > { %569 = vmatmul.bf16.vlgmr.msra.gmra.mxu2 %v970_v33  ;;  %598 = vmatmul.bf16.vlgmr.msra.gmra.mxu3 %v970_v33  ;;  %s690_s13 = scalar_lea.hbm %s1582_s5, %s967_s9 }
  0x7b   : > { %s693_s27 = sshll.u32 %s690_s13, 4  ;;  %s694_s27 = int_to_ptr.hbm [resolvable:$true] %s693_s27 }
  0x7c   : > { %s1210_s23 = sshra.s32 %s694_s27, 4  ;;  %s1211_s23 = int_to_ptr.hbm [resolvable:$true] %s1210_s23 }
  0x7d   : > { %s1212_s7 = scalar_lea.hbm %s1211_s23, 128  ;;  %p1217_p9 = scmp.lt.s32.totalorder %s1211_s23, %s1582_s5 }
  0x7e   : > { %p1213_p1 = scmp.ne.s32.totalorder %s1211_s23, %s1212_s7  ;;  %p1218_p12 = scmp.lt.s32.totalorder %s1216_s3, %s1212_s7 }
  0x80   : > { %p1214_p2 = pnand %p1213_p1, %p1398_p8  ;;  %p1219_p13 = por %p1218_p12, %p1217_p9 }
  0x82   : > { %p1215_p11 = pneg %p1214_p2 }
  0x84   : > { %p1220_p0 = pnand %p1219_p13, %p1215_p11 }
  0x88   : > { %412 = vmatmul.bf16.gmra.mxu0 %v991_v34 }
  0x89   : > { %441 = vmatmul.bf16.gmra.mxu1 %v991_v34 }
  0x8a   : > { %574 = vmatmul.bf16.gmra.mxu2 %v971_v35  ;;  %603 = vmatmul.bf16.gmra.mxu3 %v971_v35 }
  0x98   : > { %417 = vmatmul.bf16.gmra.mxu0 %v992_v36 }
  0x99   : > { %446 = vmatmul.bf16.gmra.mxu1 %v992_v36 }
  0x9a   : > { %579 = vmatmul.bf16.gmra.mxu2 %v972_v37  ;;  %608 = vmatmul.bf16.gmra.mxu3 %v972_v37 }
  0xa8   : > { %422 = vmatmul.bf16.gmra.mxu0 %v993_v38 }
  0xa9   : > { %451 = vmatmul.bf16.gmra.mxu1 %v993_v38 }
  0xaa   : > { %584 = vmatmul.bf16.gmra.mxu2 %v973_v39  ;;  %613 = vmatmul.bf16.gmra.mxu3 %v973_v39 }
  0xf5   : > { %v408_v40 = vpop.f32.mrf.mxu0 }
  0xf6   : > { %v437_v41 = vpop.f32.mrf.mxu1 }
  0xfd   : > { %v570_v44 = vpop.f32.mrf.mxu2  ;;  %v599_v47 = vpop.f32.mrf.mxu3 }
  0xfe   : > { %v571_v46 = vadd.f32 %v570_v44, %v408_v40  ;;  %v410_v48 = vpop.f32.mrf.mxu0  ;;  %v600_v49 = vadd.f32 %v599_v47, %v437_v41  ;;  %v439_v50 = vpop.f32.mrf.mxu1 }
 0x100   : > { %v625_v51 = vadd.f32 %v1489_v43, %v571_v46  ;;  %v626_v52 = vadd.f32 %v1491_v45, %v600_v49 }
 0x102   : > { %v641_v53 = vmax.f32 %v625_v51, 0.0  ;;  %v642_v54 = vmax.f32 %v626_v52, 0.0 }
 0x104   : > { %657 = vst [vmem:[%s1497_s18] sm:$0xff] %v641_v53 }
 0x105   : > { %658 = vst [vmem:[%s1497_s18 + $0x8] sm:$0xff] %v642_v54  ;;  %v572_v55 = vpop.f32.mrf.mxu2  ;;  %v601_v57 = vpop.f32.mrf.mxu3 }
 0x106   : > { %v573_v56 = vadd.f32 %v572_v55, %v410_v48  ;;  %v413_v58 = vpop.f32.mrf.mxu0  ;;  %v602_v59 = vadd.f32 %v601_v57, %v439_v50  ;;  %v442_v60 = vpop.f32.mrf.mxu1 }
 0x108   : > { %v627_v61 = vadd.f32 %v1489_v43, %v573_v56  ;;  %v628_v62 = vadd.f32 %v1491_v45, %v602_v59 }
 0x10a   : > { %v643_v63 = vmax.f32 %v627_v61, 0.0  ;;  %v644_v0 = vmax.f32 %v628_v62, 0.0 }
 0x10c   : > { %659 = vst [vmem:[%s1497_s18 + $0x10] sm:$0xff] %v643_v63 }
 0x10d   : > { %660 = vst [vmem:[%s1497_s18 + $0x18] sm:$0xff] %v644_v0  ;;  %v575_v1 = vpop.f32.mrf.mxu2  ;;  %v604_v3 = vpop.f32.mrf.mxu3 }
 0x10e   : > { %v576_v2 = vadd.f32 %v575_v1, %v413_v58  ;;  %v415_v4 = vpop.f32.mrf.mxu0  ;;  %v605_v5 = vadd.f32 %v604_v3, %v442_v60  ;;  %v444_v6 = vpop.f32.mrf.mxu1 }
 0x110   : > { %v629_v7 = vadd.f32 %v1489_v43, %v576_v2  ;;  %v630_v8 = vadd.f32 %v1491_v45, %v605_v5 }
 0x112   : > { %v645_v9 = vmax.f32 %v629_v7, 0.0  ;;  %v646_v10 = vmax.f32 %v630_v8, 0.0 }
 0x114   : > { %661 = vst [vmem:[%s1497_s18 + $0x20] sm:$0xff] %v645_v9 }
 0x115   : > { %662 = vst [vmem:[%s1497_s18 + $0x28] sm:$0xff] %v646_v10  ;;  %v577_v11 = vpop.f32.mrf.mxu2  ;;  %v606_v13 = vpop.f32.mrf.mxu3 }
 0x116   : > { %v578_v12 = vadd.f32 %v577_v11, %v415_v4  ;;  %v607_v14 = vadd.f32 %v606_v13, %v444_v6  ;;  %v418_v15 = vpop.f32.mrf.mxu0  ;;  %v447_v17 = vpop.f32.mrf.mxu1 }
 0x118   : > { %v631_v16 = vadd.f32 %v1489_v43, %v578_v12  ;;  %v632_v18 = vadd.f32 %v1491_v45, %v607_v14 }
 0x11a   : > { %v647_v19 = vmax.f32 %v631_v16, 0.0  ;;  %v648_v20 = vmax.f32 %v632_v18, 0.0 }
 0x11c   : > { %663 = vst [vmem:[%s1497_s18 + $0x30] sm:$0xff] %v647_v19 }
 0x11d   : > { %664 = vst [vmem:[%s1497_s18 + $0x38] sm:$0xff] %v648_v20  ;;  %v580_v21 = vpop.f32.mrf.mxu2  ;;  %v609_v23 = vpop.f32.mrf.mxu3 }
 0x11e   : > { %v581_v22 = vadd.f32 %v580_v21, %v418_v15  ;;  %v610_v24 = vadd.f32 %v609_v23, %v447_v17  ;;  %v420_v27 = vpop.f32.mrf.mxu0  ;;  %v449_v29 = vpop.f32.mrf.mxu1 }
 0x120   : > { %v633_v25 = vadd.f32 %v1489_v43, %v581_v22  ;;  %v634_v26 = vadd.f32 %v1491_v45, %v610_v24 }
 0x122   : > { %v649_v28 = vmax.f32 %v633_v25, 0.0  ;;  %v650_v30 = vmax.f32 %v634_v26, 0.0 }
 0x124   : > { %665 = vst [vmem:[%s1497_s18 + $0x40] sm:$0xff] %v649_v28 }
 0x125   : > { %666 = vst [vmem:[%s1497_s18 + $0x48] sm:$0xff] %v650_v30  ;;  %v582_v31 = vpop.f32.mrf.mxu2  ;;  %v611_v33 = vpop.f32.mrf.mxu3 }
 0x126   : > { %v583_v32 = vadd.f32 %v582_v31, %v420_v27  ;;  %v612_v34 = vadd.f32 %v611_v33, %v449_v29  ;;  %v423_v39 = vpop.f32.mrf.mxu0  ;;  %v452_v40 = vpop.f32.mrf.mxu1 }
 0x128   : > { %v635_v35 = vadd.f32 %v1489_v43, %v583_v32  ;;  %v636_v36 = vadd.f32 %v1491_v45, %v612_v34 }
 0x12a   : > { %v651_v37 = vmax.f32 %v635_v35, 0.0  ;;  %v652_v38 = vmax.f32 %v636_v36, 0.0 }
 0x12c   : > { %667 = vst [vmem:[%s1497_s18 + $0x50] sm:$0xff] %v651_v37 }
 0x12d   : > { %668 = vst [vmem:[%s1497_s18 + $0x58] sm:$0xff] %v652_v38  ;;  %v585_v41 = vpop.f32.mrf.mxu2  ;;  %v614_v44 = vpop.f32.mrf.mxu3 }
 0x12e   : > { %v586_v42 = vadd.f32 %v585_v41, %v423_v39  ;;  %v615_v46 = vadd.f32 %v614_v44, %v452_v40  ;;  %v425_v51 = vpop.f32.mrf.mxu0  ;;  %v454_v53 = vpop.f32.mrf.mxu1 }
 0x130   : > { %v637_v47 = vadd.f32 %v1489_v43, %v586_v42  ;;  %v638_v48 = vadd.f32 %v1491_v45, %v615_v46 }
 0x132   : > { %v653_v49 = vmax.f32 %v637_v47, 0.0  ;;  %v654_v50 = vmax.f32 %v638_v48, 0.0 }
 0x134   : > { %669 = vst [vmem:[%s1497_s18 + $0x60] sm:$0xff] %v653_v49 }
 0x135   : > { %670 = vst [vmem:[%s1497_s18 + $0x68] sm:$0xff] %v654_v50  ;;  %v587_v52 = vpop.f32.mrf.mxu2  ;;  %v616_v55 = vpop.f32.mrf.mxu3 }
 0x136   : > { %v588_v54 = vadd.f32 %v587_v52, %v425_v51  ;;  %v617_v56 = vadd.f32 %v616_v55, %v454_v53 }
 0x138   : > { %v639_v57 = vadd.f32 %v1489_v43, %v588_v54  ;;  %v640_v58 = vadd.f32 %v1491_v45, %v617_v56 }
 0x13a   : > { %v655_v59 = vmax.f32 %v639_v57, 0.0  ;;  %v656_v60 = vmax.f32 %v640_v58, 0.0 }
 0x13c   : > { %671 = vst [vmem:[%s1497_s18 + $0x70] sm:$0xff] %v655_v59 }
 0x13d   : > { %672 = vst [vmem:[%s1497_s18 + $0x78] sm:$0xff] %v656_v60 }
 0x13e   : > { %1223 = shalt.err (!%p1220_p0)
}
 0x13f   : > { %s1301_s12 = smov 256   ;;  %s1302_s18 = smov 16  }
 0x140   : > { %1025 = dma.vmem_to_hbm [thread:$0]  (%p1398_p8), %s692_s14, 2048, %s694_s27, %s674_s8, %s1301_s12, %s1301_s12, %s1302_s18  }
 0x141 PF: > { %p1046_p3 = scmp.ge.s32.totalorder %s1292_s30, 2  ;;  %s708_s21 = sand.u32 1, %s1268_s26  }
 0x142   : > { %s709_s22 = scalar_lea.sflag [#allocation7], %s708_s21 }
 0x143   : > { %p1040_p4 = pnand %p1046_p3, %p1403_p10 }
 0x145   : > { %p1041_p5 = pneg %p1040_p4 }
 0x147   : > { %1263 = dma.done.wait (%p1041_p5), %s709_s22, 2048  }
 0x148   : > { %1265 = vsyncadd (%p1041_p5), %s709_s22, 4294965248  ;;  %s1604_s30 = sld [smem:[#allocation23_spill]]  ;;  %s1609_s26 = smov %s1272_s0 }
 0x149   : > { %s1605_s19 = sld [smem:[#allocation21_spill]]  ;;  %s1611_s1 = smov %s1284_s28 }
 0x14a   : > { %s1606_s27 = sld [smem:[#allocation25_spill]] }
 0x14b   : > { %s1607_s11 = sld [smem:[#allocation22_spill]] }
 0x14c   : > { %s1608_s29 = sld [smem:[#allocation26_spill]] }
 0x14e   : > { %p32_p8 = scmp.ge.s32.totalorder %s1604_s30, 6  }
 0x14f   : > { %s1610_s0 = smov %s1605_s19 }
 0x150   :  { %34 = sbr.rel (!%p32_p8) target bundleno = 16 (0x10), region = 83 }
 0x151   : > { %s1612_s28 = smov %s1607_s11 }
 0x155   :  { %715 = vsyncpa [#allocation6], 1 }
 0x156   :  { %717 = vsyncpa [#allocation6 + $0x1], 1 }
 0x157   :  { %718 = vsyncpa [#allocation9], 1 }
 0x158   :  { %719 = vsyncpa [#allocation7], 1 }
 0x159   :  { %721 = vsyncpa [#allocation7 + $0x1], 1 }

</bundles_post_ra>
